<compile_context>
chip_gen: v7x
topology: tpu7x:2x2x1
jax: 0.10.0
libtpu: 0.0.40
codegen_flags: <defaults>
</compile_context>

<pallas_src>
import jax
import jax.numpy as jnp
from jax import lax
from jax.experimental import pallas as pl
from jax.experimental.pallas import tpu as pltpu

_KEPS = 1e-8      # pytorch3d kEpsilon
_LANES = 128
_NCOEF = 9        # A0,B0,C0, A1,B1,C1, Az,Bz,Cz   (w2 recovered as 1-w0-w1)
_UNROLL = 4       # faces per inner-loop iteration


def _make_rasterize_kernel(F, F_pad, tile_r, H, W, range_x, range_y):
    shape = (tile_r, _LANES)
    inv_w = 1.0 / W
    inv_h = 1.0 / H
    off_x = 0.5 * range_x
    off_y = 0.5 * range_y

    def kernel(coef_ref, p2f_ref, bary_ref):
        # coef_ref : SMEM (N*F_pad*9,) f32  affine plane coefficients per face
        #            (culled / padded faces hold all-zero rows -> never hit)
        # p2f_ref  : VMEM (tile_r, 128) i32 output block
        # bary_ref : VMEM (3, tile_r, 128) f32 output block
        n = pl.program_id(0)
        t = pl.program_id(1)

        # Lane-dense pixel-center NDC coordinates generated in-kernel
        # (pytorch3d: +X left, +Y up, reversed pixel ordering).
        row = lax.broadcasted_iota(jnp.int32, shape, 0)
        lane = lax.broadcasted_iota(jnp.int32, shape, 1)
        p = ((t * tile_r + row) * _LANES + lane).astype(jnp.float32)
        # floor((p+0.5)/W) is exact while H*W < ~4M pixels (f32); covers the
        # image sizes this module is used at (default 224).
        yi = jnp.floor((p + 0.5) * inv_w)
        xi = p - yi * float(W)
        xf = off_x - (range_x * xi + off_x) * inv_w
        yf = off_y - (range_y * yi + off_y) * inv_h

        init = (
            jnp.full(shape, jnp.inf, jnp.float32),   # zbuf
            jnp.full(shape, -1, jnp.int32),          # pix_to_face
            jnp.full(shape, -1.0, jnp.float32),      # bary w0
            jnp.full(shape, -1.0, jnp.float32),      # bary w1
        )

        def body(i, carry):
            zbuf, p2f, b0a, b1a = carry
            f0 = i * _UNROLL
            for u in range(_UNROLL):                 # manual 4-face unroll
                f = f0 + u
                base = (n * F_pad + f) * _NCOEF
                a0 = coef_ref[base + 0]
                b0 = coef_ref[base + 1]
                c0 = coef_ref[base + 2]
                a1 = coef_ref[base + 3]
                b1 = coef_ref[base + 4]
                c1 = coef_ref[base + 5]
                az = coef_ref[base + 6]
                bz = coef_ref[base + 7]
                cz = coef_ref[base + 8]

                # barycentric coords / depth as affine planes (1/area folded
                # into the coefficients); w2 from the sum-to-one identity.
                w0 = a0 * xf + b0 * yf + c0
                w1 = a1 * xf + b1 * yf + c1
                w2 = 1.0 - w0 - w1
                pz = az * xf + bz * yf + cz

                # blur_radius == 0 => strictly-inside pixels only; faces behind
                # the image plane dropped; strict z test keeps the earlier face.
                hit = ((jnp.minimum(jnp.minimum(w0, w1), w2) > 0.0)
                       & (pz >= 0.0) & (pz < zbuf))

                fidx = n * F + f                     # packed face index (orig F)
                zbuf = jnp.where(hit, pz, zbuf)
                p2f = jnp.where(hit, fidx, p2f)
                b0a = jnp.where(hit, w0, b0a)
                b1a = jnp.where(hit, w1, b1a)
            return zbuf, p2f, b0a, b1a

        _, p2f, b0a, b1a = lax.fori_loop(0, F_pad // _UNROLL, body, init)

        covered = p2f >= 0
        p2f_ref[...] = p2f
        bary_ref[0, :, :] = b0a
        bary_ref[1, :, :] = b1a
        bary_ref[2, :, :] = jnp.where(covered, 1.0 - b0a - b1a, -1.0)

    return kernel


def pytorch3d_rasterize(vertices, faces, image_size=224, h=None, w=None):
    """Reproduces Pytorch3dRasterizer.forward -> (pix_to_face, bary_coords)."""
    vertices = vertices.astype(jnp.float32)
    # fixed_vertices[..., :2] = -fixed_vertices[..., :2]
    fixed = vertices * jnp.array([-1.0, -1.0, 1.0], jnp.float32)

    if h is None and w is None:
        H = W = int(image_size)
    else:
        H, W = int(h), int(w)
        if H > W:
            fixed = fixed * jnp.array([1.0, float(H) / W, 1.0], jnp.float32)
        else:
            fixed = fixed * jnp.array([float(W) / H, 1.0, 1.0], jnp.float32)

    N = vertices.shape[0]
    F = faces.shape[1]

    # ----- JAX glue: gather per-face vertices, build affine coefficients -----
    face_verts = jax.vmap(lambda v, f: v[f])(fixed, faces.astype(jnp.int32))  # (N,F,3,3)
    v0, v1, v2 = face_verts[:, :, 0, :], face_verts[:, :, 1, :], face_verts[:, :, 2, :]
    x0, y0, z0 = v0[..., 0], v0[..., 1], v0[..., 2]
    x1, y1, z1 = v1[..., 0], v1[..., 1], v1[..., 2]
    x2, y2, z2 = v2[..., 0], v2[..., 1], v2[..., 2]

    # 2x signed area; cull_backfaces=True drops area < 0, |area| <= kEps skipped.
    area = (x2 - x0) * (y1 - y0) - (y2 - y0) * (x1 - x0)
    face_ok = area > _KEPS
    # exact-area division (guarded); culled faces get all-zero coefficients,
    # which can never pass the min(w0,w1,w2) > 0 coverage test in the kernel.
    inv_area = jnp.where(face_ok, 1.0, 0.0) / jnp.where(face_ok, area, 1.0)

    a0 = (y2 - y1) * inv_area
    b0 = (x1 - x2) * inv_area
    c0 = (x2 * y1 - x1 * y2) * inv_area
    a1 = (y0 - y2) * inv_area
    b1 = (x2 - x0) * inv_area
    c1 = (x0 * y2 - x2 * y0) * inv_area
    a2 = (y1 - y0) * inv_area
    b2 = (x0 - x1) * inv_area
    c2 = (x1 * y0 - x0 * y1) * inv_area
    az = a0 * z0 + a1 * z1 + a2 * z2
    bz = b0 * z0 + b1 * z1 + b2 * z2
    cz = c0 * z0 + c1 * z1 + c2 * z2
    coef = jnp.stack([a0, b0, c0, a1, b1, c1, az, bz, cz], -1)   # (N,F,9)

    # Pad the face axis to a multiple of the unroll factor with zero rows
    # (zero coefficients => w0 = w1 = 0 => never hit), then flatten to a 1D
    # SMEM table (avoids the 8-row padding waste of a 2D SMEM layout).
    F_pad = -(-F // _UNROLL) * _UNROLL
    coef = jnp.pad(coef, ((0, 0), (0, F_pad - F), (0, 0)))
    coef_flat = coef.reshape(N * F_pad * _NCOEF).astype(jnp.float32)

    # pytorch3d non-square NDC ranges (== 2.0 for square images)
    range_y = 2.0 * H / W if H > W else 2.0
    range_x = 2.0 * W / H if W > H else 2.0

    # Lane-dense flattened pixel plane: H*W pixels -> (R_pad, 128) row-tiles.
    P = H * W
    R = -(-P // _LANES)
    min_tiles = 2 if N == 1 else 1
    if R <= 32 and not (N == 1 and R >= 16):
        # fits a single full-dim tile: no phantom-row padding at all
        tile_r, R_pad = R, R
    else:
        if R >= 32 * min_tiles:
            tile_r = 32
        elif R >= 16 * min_tiles:
            tile_r = 16
        else:
            tile_r = 8
        R_pad = -(-R // tile_r) * tile_r
    num_tiles = R_pad // tile_r

    kernel = _make_rasterize_kernel(F, F_pad, tile_r, H, W, range_x, range_y)

    p2f_plane, bary_plane = pl.pallas_call(
        kernel,
        grid=(N, num_tiles),
        in_specs=[
            pl.BlockSpec(memory_space=pltpu.MemorySpace.SMEM),            # coef
        ],
        out_specs=(
            pl.BlockSpec((None, tile_r, _LANES), lambda n, t: (n, t, 0)),
            pl.BlockSpec((None, 3, tile_r, _LANES), lambda n, t: (n, 0, t, 0)),
        ),
        out_shape=(
            jax.ShapeDtypeStruct((N, R_pad, _LANES), jnp.int32),
            jax.ShapeDtypeStruct((N, 3, R_pad, _LANES), jnp.float32),
        ),
        compiler_params=pltpu.CompilerParams(
            dimension_semantics=("parallel", "parallel")),
    )(coef_flat)

    # Un-flatten the lane-dense planes back to the pytorch3d output layout.
    p2f = p2f_plane.reshape(N, R_pad * _LANES)[:, :P].reshape(N, H, W)
    pix_to_face = p2f[..., None]                                          # (N,H,W,1)
    bary = bary_plane.reshape(N, 3, R_pad * _LANES)[:, :, :P].reshape(N, 3, H, W)
    bary_coords = jnp.transpose(bary, (0, 2, 3, 1))[:, :, :, None, :]     # (N,H,W,1,3)
    return pix_to_face, bary_coords


if __name__ == "__main__":
    key = jax.random.PRNGKey(0)
    N, V, F, IMG = 2, 32, 12, 16
    kxy, kz, kf = jax.random.split(key, 3)
    xy = jax.random.uniform(kxy, (N, V, 2), jnp.float32, -0.9, 0.9)
    z = jax.random.uniform(kz, (N, V, 1), jnp.float32, 0.5, 2.0)
    vertices = jnp.concatenate([xy, z], axis=-1)           # (N, V, 3)
    faces = jax.random.randint(kf, (N, F, 3), 0, V, dtype=jnp.int32)

    pix_to_face, bary_coords = pytorch3d_rasterize(vertices, faces, image_size=IMG)
    jax.block_until_ready((pix_to_face, bary_coords))

    assert pix_to_face.shape == (N, IMG, IMG, 1)
    assert pix_to_face.dtype == jnp.int32
    assert bary_coords.shape == (N, IMG, IMG, 1, 3)
    assert bary_coords.dtype == jnp.float32
    print("KERNEL_OK")
</pallas_src>

<mosaic_0001>
module attributes {stable_mosaic.version = 11 : i64} {
  func.func @kernel(%arg0: i32, %arg1: i32, %arg2: memref<216xf32, #tpu.memory_space<smem>>, %arg3: memref<1x2x128xi32, #tpu.memory_space<vmem>>, %arg4: memref<1x3x2x128xf32, #tpu.memory_space<vmem>>) attributes {dimension_semantics = [#tpu.dimension_semantics<parallel>, #tpu.dimension_semantics<parallel>], iteration_bounds = array<i64: 2, 1>, scalar_prefetch = 0 : i64, scratch_operands = 0 : i64, tpu.core_type = #tpu.core_type<tc>, window_params = [{transform_indices = @transform_0, window_bounds = array<i64: 216>}, {transform_indices = @transform_1, window_bounds = array<i64: 1, 2, 128>}, {transform_indices = @transform_2, window_bounds = array<i64: 1, 3, 2, 128>}]} {
    %0 = tpu.iota {dimensions = array<i32: 0>} : vector<2x128xi32>
    %1 = tpu.iota {dimensions = array<i32: 1>} : vector<2x128xi32>
    %c2_i32 = arith.constant 2 : i32
    %2 = arith.muli %arg1, %c2_i32 : i32
    %3 = vector.broadcast %2 : i32 to vector<2x128xi32>
    %4 = arith.addi %3, %0 : vector<2x128xi32>
    %c128_i32 = arith.constant 128 : i32
    %5 = vector.broadcast %c128_i32 : i32 to vector<2x128xi32>
    %6 = arith.muli %4, %5 : vector<2x128xi32>
    %7 = arith.addi %6, %1 : vector<2x128xi32>
    %8 = arith.sitofp %7 : vector<2x128xi32> to vector<2x128xf32>
    %cst = arith.constant 5.000000e-01 : f32
    %9 = vector.broadcast %cst : f32 to vector<2x128xf32>
    %10 = arith.addf %8, %9 : vector<2x128xf32>
    %cst_0 = arith.constant 6.250000e-02 : f32
    %11 = vector.broadcast %cst_0 : f32 to vector<2x128xf32>
    %12 = arith.mulf %10, %11 : vector<2x128xf32>
    %13 = math.floor %12 : vector<2x128xf32>
    %cst_1 = arith.constant 1.600000e+01 : f32
    %14 = vector.broadcast %cst_1 : f32 to vector<2x128xf32>
    %15 = arith.mulf %13, %14 : vector<2x128xf32>
    %16 = arith.subf %8, %15 : vector<2x128xf32>
    %cst_2 = arith.constant 2.000000e+00 : f32
    %17 = vector.broadcast %cst_2 : f32 to vector<2x128xf32>
    %18 = arith.mulf %17, %16 : vector<2x128xf32>
    %cst_3 = arith.constant 1.000000e+00 : f32
    %19 = vector.broadcast %cst_3 : f32 to vector<2x128xf32>
    %20 = arith.addf %18, %19 : vector<2x128xf32>
    %cst_4 = arith.constant 6.250000e-02 : f32
    %21 = vector.broadcast %cst_4 : f32 to vector<2x128xf32>
    %22 = arith.mulf %20, %21 : vector<2x128xf32>
    %cst_5 = arith.constant 1.000000e+00 : f32
    %23 = vector.broadcast %cst_5 : f32 to vector<2x128xf32>
    %24 = arith.subf %23, %22 : vector<2x128xf32>
    %cst_6 = arith.constant 2.000000e+00 : f32
    %25 = vector.broadcast %cst_6 : f32 to vector<2x128xf32>
    %26 = arith.mulf %25, %13 : vector<2x128xf32>
    %cst_7 = arith.constant 1.000000e+00 : f32
    %27 = vector.broadcast %cst_7 : f32 to vector<2x128xf32>
    %28 = arith.addf %26, %27 : vector<2x128xf32>
    %cst_8 = arith.constant 6.250000e-02 : f32
    %29 = vector.broadcast %cst_8 : f32 to vector<2x128xf32>
    %30 = arith.mulf %28, %29 : vector<2x128xf32>
    %cst_9 = arith.constant 1.000000e+00 : f32
    %31 = vector.broadcast %cst_9 : f32 to vector<2x128xf32>
    %32 = arith.subf %31, %30 : vector<2x128xf32>
    %cst_10 = arith.constant 0x7F800000 : f32
    %33 = vector.broadcast %cst_10 : f32 to vector<2x128xf32>
    %c-1_i32 = arith.constant -1 : i32
    %34 = vector.broadcast %c-1_i32 : i32 to vector<2x128xi32>
    %cst_11 = arith.constant -1.000000e+00 : f32
    %35 = vector.broadcast %cst_11 : f32 to vector<2x128xf32>
    %cst_12 = arith.constant -1.000000e+00 : f32
    %36 = vector.broadcast %cst_12 : f32 to vector<2x128xf32>
    %c0_i32 = arith.constant 0 : i32
    %c3_i32 = arith.constant 3 : i32
    %37 = arith.addi %c0_i32, %c3_i32 : i32
    %c1_i32 = arith.constant 1 : i32
    %38:4 = scf.for %arg5 = %c0_i32 to %37 step %c1_i32 iter_args(%arg6 = %33, %arg7 = %34, %arg8 = %35, %arg9 = %36) -> (vector<2x128xf32>, vector<2x128xi32>, vector<2x128xf32>, vector<2x128xf32>)  : i32 {
      %c4_i32 = arith.constant 4 : i32
      %58 = arith.muli %arg5, %c4_i32 : i32
      %c0_i32_29 = arith.constant 0 : i32
      %59 = arith.addi %58, %c0_i32_29 : i32
      %c12_i32 = arith.constant 12 : i32
      %60 = arith.muli %arg0, %c12_i32 : i32
      %61 = arith.addi %60, %59 : i32
      %c9_i32 = arith.constant 9 : i32
      %62 = arith.muli %61, %c9_i32 : i32
      %c0_i32_30 = arith.constant 0 : i32
      %63 = arith.addi %62, %c0_i32_30 : i32
      %64 = arith.index_cast %63 : i32 to index
      %65 = memref.load %arg2[%64] : memref<216xf32, #tpu.memory_space<smem>>
      %c1_i32_31 = arith.constant 1 : i32
      %66 = arith.addi %62, %c1_i32_31 : i32
      %67 = arith.index_cast %66 : i32 to index
      %68 = memref.load %arg2[%67] : memref<216xf32, #tpu.memory_space<smem>>
      %c2_i32_32 = arith.constant 2 : i32
      %69 = arith.addi %62, %c2_i32_32 : i32
      %70 = arith.index_cast %69 : i32 to index
      %71 = memref.load %arg2[%70] : memref<216xf32, #tpu.memory_space<smem>>
      %c3_i32_33 = arith.constant 3 : i32
      %72 = arith.addi %62, %c3_i32_33 : i32
      %73 = arith.index_cast %72 : i32 to index
      %74 = memref.load %arg2[%73] : memref<216xf32, #tpu.memory_space<smem>>
      %c4_i32_34 = arith.constant 4 : i32
      %75 = arith.addi %62, %c4_i32_34 : i32
      %76 = arith.index_cast %75 : i32 to index
      %77 = memref.load %arg2[%76] : memref<216xf32, #tpu.memory_space<smem>>
      %c5_i32 = arith.constant 5 : i32
      %78 = arith.addi %62, %c5_i32 : i32
      %79 = arith.index_cast %78 : i32 to index
      %80 = memref.load %arg2[%79] : memref<216xf32, #tpu.memory_space<smem>>
      %c6_i32 = arith.constant 6 : i32
      %81 = arith.addi %62, %c6_i32 : i32
      %82 = arith.index_cast %81 : i32 to index
      %83 = memref.load %arg2[%82] : memref<216xf32, #tpu.memory_space<smem>>
      %c7_i32 = arith.constant 7 : i32
      %84 = arith.addi %62, %c7_i32 : i32
      %85 = arith.index_cast %84 : i32 to index
      %86 = memref.load %arg2[%85] : memref<216xf32, #tpu.memory_space<smem>>
      %c8_i32 = arith.constant 8 : i32
      %87 = arith.addi %62, %c8_i32 : i32
      %88 = arith.index_cast %87 : i32 to index
      %89 = memref.load %arg2[%88] : memref<216xf32, #tpu.memory_space<smem>>
      %90 = vector.broadcast %65 : f32 to vector<2x128xf32>
      %91 = arith.mulf %90, %24 : vector<2x128xf32>
      %92 = vector.broadcast %68 : f32 to vector<2x128xf32>
      %93 = arith.mulf %92, %32 : vector<2x128xf32>
      %94 = arith.addf %91, %93 : vector<2x128xf32>
      %95 = vector.broadcast %71 : f32 to vector<2x128xf32>
      %96 = arith.addf %94, %95 : vector<2x128xf32>
      %97 = vector.broadcast %74 : f32 to vector<2x128xf32>
      %98 = arith.mulf %97, %24 : vector<2x128xf32>
      %99 = vector.broadcast %77 : f32 to vector<2x128xf32>
      %100 = arith.mulf %99, %32 : vector<2x128xf32>
      %101 = arith.addf %98, %100 : vector<2x128xf32>
      %102 = vector.broadcast %80 : f32 to vector<2x128xf32>
      %103 = arith.addf %101, %102 : vector<2x128xf32>
      %cst_35 = arith.constant 1.000000e+00 : f32
      %104 = vector.broadcast %cst_35 : f32 to vector<2x128xf32>
      %105 = arith.subf %104, %96 : vector<2x128xf32>
      %106 = arith.subf %105, %103 : vector<2x128xf32>
      %107 = vector.broadcast %83 : f32 to vector<2x128xf32>
      %108 = arith.mulf %107, %24 : vector<2x128xf32>
      %109 = vector.broadcast %86 : f32 to vector<2x128xf32>
      %110 = arith.mulf %109, %32 : vector<2x128xf32>
      %111 = arith.addf %108, %110 : vector<2x128xf32>
      %112 = vector.broadcast %89 : f32 to vector<2x128xf32>
      %113 = arith.addf %111, %112 : vector<2x128xf32>
      %114 = arith.minimumf %96, %103 : vector<2x128xf32>
      %115 = arith.minimumf %114, %106 : vector<2x128xf32>
      %cst_36 = arith.constant 0.000000e+00 : f32
      %116 = vector.broadcast %cst_36 : f32 to vector<2x128xf32>
      %117 = arith.cmpf ogt, %115, %116 : vector<2x128xf32>
      %cst_37 = arith.constant 0.000000e+00 : f32
      %118 = vector.broadcast %cst_37 : f32 to vector<2x128xf32>
      %119 = arith.cmpf oge, %113, %118 : vector<2x128xf32>
      %120 = arith.andi %117, %119 : vector<2x128xi1>
      %121 = arith.cmpf olt, %113, %arg6 : vector<2x128xf32>
      %122 = arith.andi %120, %121 : vector<2x128xi1>
      %c12_i32_38 = arith.constant 12 : i32
      %123 = arith.muli %arg0, %c12_i32_38 : i32
      %124 = arith.addi %123, %59 : i32
      %125 = arith.select %122, %113, %arg6 : vector<2x128xi1>, vector<2x128xf32>
      %126 = vector.broadcast %124 : i32 to vector<2x128xi32>
      %127 = arith.select %122, %126, %arg7 : vector<2x128xi1>, vector<2x128xi32>
      %128 = arith.select %122, %96, %arg8 : vector<2x128xi1>, vector<2x128xf32>
      %129 = arith.select %122, %103, %arg9 : vector<2x128xi1>, vector<2x128xf32>
      %c1_i32_39 = arith.constant 1 : i32
      %130 = arith.addi %58, %c1_i32_39 : i32
      %c12_i32_40 = arith.constant 12 : i32
      %131 = arith.muli %arg0, %c12_i32_40 : i32
      %132 = arith.addi %131, %130 : i32
      %c9_i32_41 = arith.constant 9 : i32
      %133 = arith.muli %132, %c9_i32_41 : i32
      %c0_i32_42 = arith.constant 0 : i32
      %134 = arith.addi %133, %c0_i32_42 : i32
      %135 = arith.index_cast %134 : i32 to index
      %136 = memref.load %arg2[%135] : memref<216xf32, #tpu.memory_space<smem>>
      %c1_i32_43 = arith.constant 1 : i32
      %137 = arith.addi %133, %c1_i32_43 : i32
      %138 = arith.index_cast %137 : i32 to index
      %139 = memref.load %arg2[%138] : memref<216xf32, #tpu.memory_space<smem>>
      %c2_i32_44 = arith.constant 2 : i32
      %140 = arith.addi %133, %c2_i32_44 : i32
      %141 = arith.index_cast %140 : i32 to index
      %142 = memref.load %arg2[%141] : memref<216xf32, #tpu.memory_space<smem>>
      %c3_i32_45 = arith.constant 3 : i32
      %143 = arith.addi %133, %c3_i32_45 : i32
      %144 = arith.index_cast %143 : i32 to index
      %145 = memref.load %arg2[%144] : memref<216xf32, #tpu.memory_space<smem>>
      %c4_i32_46 = arith.constant 4 : i32
      %146 = arith.addi %133, %c4_i32_46 : i32
      %147 = arith.index_cast %146 : i32 to index
      %148 = memref.load %arg2[%147] : memref<216xf32, #tpu.memory_space<smem>>
      %c5_i32_47 = arith.constant 5 : i32
      %149 = arith.addi %133, %c5_i32_47 : i32
      %150 = arith.index_cast %149 : i32 to index
      %151 = memref.load %arg2[%150] : memref<216xf32, #tpu.memory_space<smem>>
      %c6_i32_48 = arith.constant 6 : i32
      %152 = arith.addi %133, %c6_i32_48 : i32
      %153 = arith.index_cast %152 : i32 to index
      %154 = memref.load %arg2[%153] : memref<216xf32, #tpu.memory_space<smem>>
      %c7_i32_49 = arith.constant 7 : i32
      %155 = arith.addi %133, %c7_i32_49 : i32
      %156 = arith.index_cast %155 : i32 to index
      %157 = memref.load %arg2[%156] : memref<216xf32, #tpu.memory_space<smem>>
      %c8_i32_50 = arith.constant 8 : i32
      %158 = arith.addi %133, %c8_i32_50 : i32
      %159 = arith.index_cast %158 : i32 to index
      %160 = memref.load %arg2[%159] : memref<216xf32, #tpu.memory_space<smem>>
      %161 = vector.broadcast %136 : f32 to vector<2x128xf32>
      %162 = arith.mulf %161, %24 : vector<2x128xf32>
      %163 = vector.broadcast %139 : f32 to vector<2x128xf32>
      %164 = arith.mulf %163, %32 : vector<2x128xf32>
      %165 = arith.addf %162, %164 : vector<2x128xf32>
      %166 = vector.broadcast %142 : f32 to vector<2x128xf32>
      %167 = arith.addf %165, %166 : vector<2x128xf32>
      %168 = vector.broadcast %145 : f32 to vector<2x128xf32>
      %169 = arith.mulf %168, %24 : vector<2x128xf32>
      %170 = vector.broadcast %148 : f32 to vector<2x128xf32>
      %171 = arith.mulf %170, %32 : vector<2x128xf32>
      %172 = arith.addf %169, %171 : vector<2x128xf32>
      %173 = vector.broadcast %151 : f32 to vector<2x128xf32>
      %174 = arith.addf %172, %173 : vector<2x128xf32>
      %cst_51 = arith.constant 1.000000e+00 : f32
      %175 = vector.broadcast %cst_51 : f32 to vector<2x128xf32>
      %176 = arith.subf %175, %167 : vector<2x128xf32>
      %177 = arith.subf %176, %174 : vector<2x128xf32>
      %178 = vector.broadcast %154 : f32 to vector<2x128xf32>
      %179 = arith.mulf %178, %24 : vector<2x128xf32>
      %180 = vector.broadcast %157 : f32 to vector<2x128xf32>
      %181 = arith.mulf %180, %32 : vector<2x128xf32>
      %182 = arith.addf %179, %181 : vector<2x128xf32>
      %183 = vector.broadcast %160 : f32 to vector<2x128xf32>
      %184 = arith.addf %182, %183 : vector<2x128xf32>
      %185 = arith.minimumf %167, %174 : vector<2x128xf32>
      %186 = arith.minimumf %185, %177 : vector<2x128xf32>
      %cst_52 = arith.constant 0.000000e+00 : f32
      %187 = vector.broadcast %cst_52 : f32 to vector<2x128xf32>
      %188 = arith.cmpf ogt, %186, %187 : vector<2x128xf32>
      %cst_53 = arith.constant 0.000000e+00 : f32
      %189 = vector.broadcast %cst_53 : f32 to vector<2x128xf32>
      %190 = arith.cmpf oge, %184, %189 : vector<2x128xf32>
      %191 = arith.andi %188, %190 : vector<2x128xi1>
      %192 = arith.cmpf olt, %184, %125 : vector<2x128xf32>
      %193 = arith.andi %191, %192 : vector<2x128xi1>
      %c12_i32_54 = arith.constant 12 : i32
      %194 = arith.muli %arg0, %c12_i32_54 : i32
      %195 = arith.addi %194, %130 : i32
      %196 = arith.select %193, %184, %125 : vector<2x128xi1>, vector<2x128xf32>
      %197 = vector.broadcast %195 : i32 to vector<2x128xi32>
      %198 = arith.select %193, %197, %127 : vector<2x128xi1>, vector<2x128xi32>
      %199 = arith.select %193, %167, %128 : vector<2x128xi1>, vector<2x128xf32>
      %200 = arith.select %193, %174, %129 : vector<2x128xi1>, vector<2x128xf32>
      %c2_i32_55 = arith.constant 2 : i32
      %201 = arith.addi %58, %c2_i32_55 : i32
      %c12_i32_56 = arith.constant 12 : i32
      %202 = arith.muli %arg0, %c12_i32_56 : i32
      %203 = arith.addi %202, %201 : i32
      %c9_i32_57 = arith.constant 9 : i32
      %204 = arith.muli %203, %c9_i32_57 : i32
      %c0_i32_58 = arith.constant 0 : i32
      %205 = arith.addi %204, %c0_i32_58 : i32
      %206 = arith.index_cast %205 : i32 to index
      %207 = memref.load %arg2[%206] : memref<216xf32, #tpu.memory_space<smem>>
      %c1_i32_59 = arith.constant 1 : i32
      %208 = arith.addi %204, %c1_i32_59 : i32
      %209 = arith.index_cast %208 : i32 to index
      %210 = memref.load %arg2[%209] : memref<216xf32, #tpu.memory_space<smem>>
      %c2_i32_60 = arith.constant 2 : i32
      %211 = arith.addi %204, %c2_i32_60 : i32
      %212 = arith.index_cast %211 : i32 to index
      %213 = memref.load %arg2[%212] : memref<216xf32, #tpu.memory_space<smem>>
      %c3_i32_61 = arith.constant 3 : i32
      %214 = arith.addi %204, %c3_i32_61 : i32
      %215 = arith.index_cast %214 : i32 to index
      %216 = memref.load %arg2[%215] : memref<216xf32, #tpu.memory_space<smem>>
      %c4_i32_62 = arith.constant 4 : i32
      %217 = arith.addi %204, %c4_i32_62 : i32
      %218 = arith.index_cast %217 : i32 to index
      %219 = memref.load %arg2[%218] : memref<216xf32, #tpu.memory_space<smem>>
      %c5_i32_63 = arith.constant 5 : i32
      %220 = arith.addi %204, %c5_i32_63 : i32
      %221 = arith.index_cast %220 : i32 to index
      %222 = memref.load %arg2[%221] : memref<216xf32, #tpu.memory_space<smem>>
      %c6_i32_64 = arith.constant 6 : i32
      %223 = arith.addi %204, %c6_i32_64 : i32
      %224 = arith.index_cast %223 : i32 to index
      %225 = memref.load %arg2[%224] : memref<216xf32, #tpu.memory_space<smem>>
      %c7_i32_65 = arith.constant 7 : i32
      %226 = arith.addi %204, %c7_i32_65 : i32
      %227 = arith.index_cast %226 : i32 to index
      %228 = memref.load %arg2[%227] : memref<216xf32, #tpu.memory_space<smem>>
      %c8_i32_66 = arith.constant 8 : i32
      %229 = arith.addi %204, %c8_i32_66 : i32
      %230 = arith.index_cast %229 : i32 to index
      %231 = memref.load %arg2[%230] : memref<216xf32, #tpu.memory_space<smem>>
      %232 = vector.broadcast %207 : f32 to vector<2x128xf32>
      %233 = arith.mulf %232, %24 : vector<2x128xf32>
      %234 = vector.broadcast %210 : f32 to vector<2x128xf32>
      %235 = arith.mulf %234, %32 : vector<2x128xf32>
      %236 = arith.addf %233, %235 : vector<2x128xf32>
      %237 = vector.broadcast %213 : f32 to vector<2x128xf32>
      %238 = arith.addf %236, %237 : vector<2x128xf32>
      %239 = vector.broadcast %216 : f32 to vector<2x128xf32>
      %240 = arith.mulf %239, %24 : vector<2x128xf32>
      %241 = vector.broadcast %219 : f32 to vector<2x128xf32>
      %242 = arith.mulf %241, %32 : vector<2x128xf32>
      %243 = arith.addf %240, %242 : vector<2x128xf32>
      %244 = vector.broadcast %222 : f32 to vector<2x128xf32>
      %245 = arith.addf %243, %244 : vector<2x128xf32>
      %cst_67 = arith.constant 1.000000e+00 : f32
      %246 = vector.broadcast %cst_67 : f32 to vector<2x128xf32>
      %247 = arith.subf %246, %238 : vector<2x128xf32>
      %248 = arith.subf %247, %245 : vector<2x128xf32>
      %249 = vector.broadcast %225 : f32 to vector<2x128xf32>
      %250 = arith.mulf %249, %24 : vector<2x128xf32>
      %251 = vector.broadcast %228 : f32 to vector<2x128xf32>
      %252 = arith.mulf %251, %32 : vector<2x128xf32>
      %253 = arith.addf %250, %252 : vector<2x128xf32>
      %254 = vector.broadcast %231 : f32 to vector<2x128xf32>
      %255 = arith.addf %253, %254 : vector<2x128xf32>
      %256 = arith.minimumf %238, %245 : vector<2x128xf32>
      %257 = arith.minimumf %256, %248 : vector<2x128xf32>
      %cst_68 = arith.constant 0.000000e+00 : f32
      %258 = vector.broadcast %cst_68 : f32 to vector<2x128xf32>
      %259 = arith.cmpf ogt, %257, %258 : vector<2x128xf32>
      %cst_69 = arith.constant 0.000000e+00 : f32
      %260 = vector.broadcast %cst_69 : f32 to vector<2x128xf32>
      %261 = arith.cmpf oge, %255, %260 : vector<2x128xf32>
      %262 = arith.andi %259, %261 : vector<2x128xi1>
      %263 = arith.cmpf olt, %255, %196 : vector<2x128xf32>
      %264 = arith.andi %262, %263 : vector<2x128xi1>
      %c12_i32_70 = arith.constant 12 : i32
      %265 = arith.muli %arg0, %c12_i32_70 : i32
      %266 = arith.addi %265, %201 : i32
      %267 = arith.select %264, %255, %196 : vector<2x128xi1>, vector<2x128xf32>
      %268 = vector.broadcast %266 : i32 to vector<2x128xi32>
      %269 = arith.select %264, %268, %198 : vector<2x128xi1>, vector<2x128xi32>
      %270 = arith.select %264, %238, %199 : vector<2x128xi1>, vector<2x128xf32>
      %271 = arith.select %264, %245, %200 : vector<2x128xi1>, vector<2x128xf32>
      %c3_i32_71 = arith.constant 3 : i32
      %272 = arith.addi %58, %c3_i32_71 : i32
      %c12_i32_72 = arith.constant 12 : i32
      %273 = arith.muli %arg0, %c12_i32_72 : i32
      %274 = arith.addi %273, %272 : i32
      %c9_i32_73 = arith.constant 9 : i32
      %275 = arith.muli %274, %c9_i32_73 : i32
      %c0_i32_74 = arith.constant 0 : i32
      %276 = arith.addi %275, %c0_i32_74 : i32
      %277 = arith.index_cast %276 : i32 to index
      %278 = memref.load %arg2[%277] : memref<216xf32, #tpu.memory_space<smem>>
      %c1_i32_75 = arith.constant 1 : i32
      %279 = arith.addi %275, %c1_i32_75 : i32
      %280 = arith.index_cast %279 : i32 to index
      %281 = memref.load %arg2[%280] : memref<216xf32, #tpu.memory_space<smem>>
      %c2_i32_76 = arith.constant 2 : i32
      %282 = arith.addi %275, %c2_i32_76 : i32
      %283 = arith.index_cast %282 : i32 to index
      %284 = memref.load %arg2[%283] : memref<216xf32, #tpu.memory_space<smem>>
      %c3_i32_77 = arith.constant 3 : i32
      %285 = arith.addi %275, %c3_i32_77 : i32
      %286 = arith.index_cast %285 : i32 to index
      %287 = memref.load %arg2[%286] : memref<216xf32, #tpu.memory_space<smem>>
      %c4_i32_78 = arith.constant 4 : i32
      %288 = arith.addi %275, %c4_i32_78 : i32
      %289 = arith.index_cast %288 : i32 to index
      %290 = memref.load %arg2[%289] : memref<216xf32, #tpu.memory_space<smem>>
      %c5_i32_79 = arith.constant 5 : i32
      %291 = arith.addi %275, %c5_i32_79 : i32
      %292 = arith.index_cast %291 : i32 to index
      %293 = memref.load %arg2[%292] : memref<216xf32, #tpu.memory_space<smem>>
      %c6_i32_80 = arith.constant 6 : i32
      %294 = arith.addi %275, %c6_i32_80 : i32
      %295 = arith.index_cast %294 : i32 to index
      %296 = memref.load %arg2[%295] : memref<216xf32, #tpu.memory_space<smem>>
      %c7_i32_81 = arith.constant 7 : i32
      %297 = arith.addi %275, %c7_i32_81 : i32
      %298 = arith.index_cast %297 : i32 to index
      %299 = memref.load %arg2[%298] : memref<216xf32, #tpu.memory_space<smem>>
      %c8_i32_82 = arith.constant 8 : i32
      %300 = arith.addi %275, %c8_i32_82 : i32
      %301 = arith.index_cast %300 : i32 to index
      %302 = memref.load %arg2[%301] : memref<216xf32, #tpu.memory_space<smem>>
      %303 = vector.broadcast %278 : f32 to vector<2x128xf32>
      %304 = arith.mulf %303, %24 : vector<2x128xf32>
      %305 = vector.broadcast %281 : f32 to vector<2x128xf32>
      %306 = arith.mulf %305, %32 : vector<2x128xf32>
      %307 = arith.addf %304, %306 : vector<2x128xf32>
      %308 = vector.broadcast %284 : f32 to vector<2x128xf32>
      %309 = arith.addf %307, %308 : vector<2x128xf32>
      %310 = vector.broadcast %287 : f32 to vector<2x128xf32>
      %311 = arith.mulf %310, %24 : vector<2x128xf32>
      %312 = vector.broadcast %290 : f32 to vector<2x128xf32>
      %313 = arith.mulf %312, %32 : vector<2x128xf32>
      %314 = arith.addf %311, %313 : vector<2x128xf32>
      %315 = vector.broadcast %293 : f32 to vector<2x128xf32>
      %316 = arith.addf %314, %315 : vector<2x128xf32>
      %cst_83 = arith.constant 1.000000e+00 : f32
      %317 = vector.broadcast %cst_83 : f32 to vector<2x128xf32>
      %318 = arith.subf %317, %309 : vector<2x128xf32>
      %319 = arith.subf %318, %316 : vector<2x128xf32>
      %320 = vector.broadcast %296 : f32 to vector<2x128xf32>
      %321 = arith.mulf %320, %24 : vector<2x128xf32>
      %322 = vector.broadcast %299 : f32 to vector<2x128xf32>
      %323 = arith.mulf %322, %32 : vector<2x128xf32>
      %324 = arith.addf %321, %323 : vector<2x128xf32>
      %325 = vector.broadcast %302 : f32 to vector<2x128xf32>
      %326 = arith.addf %324, %325 : vector<2x128xf32>
      %327 = arith.minimumf %309, %316 : vector<2x128xf32>
      %328 = arith.minimumf %327, %319 : vector<2x128xf32>
      %cst_84 = arith.constant 0.000000e+00 : f32
      %329 = vector.broadcast %cst_84 : f32 to vector<2x128xf32>
      %330 = arith.cmpf ogt, %328, %329 : vector<2x128xf32>
      %cst_85 = arith.constant 0.000000e+00 : f32
      %331 = vector.broadcast %cst_85 : f32 to vector<2x128xf32>
      %332 = arith.cmpf oge, %326, %331 : vector<2x128xf32>
      %333 = arith.andi %330, %332 : vector<2x128xi1>
      %334 = arith.cmpf olt, %326, %267 : vector<2x128xf32>
      %335 = arith.andi %333, %334 : vector<2x128xi1>
      %c12_i32_86 = arith.constant 12 : i32
      %336 = arith.muli %arg0, %c12_i32_86 : i32
      %337 = arith.addi %336, %272 : i32
      %338 = arith.select %335, %326, %267 : vector<2x128xi1>, vector<2x128xf32>
      %339 = vector.broadcast %337 : i32 to vector<2x128xi32>
      %340 = arith.select %335, %339, %269 : vector<2x128xi1>, vector<2x128xi32>
      %341 = arith.select %335, %309, %270 : vector<2x128xi1>, vector<2x128xf32>
      %342 = arith.select %335, %316, %271 : vector<2x128xi1>, vector<2x128xf32>
      scf.yield %338, %340, %341, %342 : vector<2x128xf32>, vector<2x128xi32>, vector<2x128xf32>, vector<2x128xf32>
    }
    %c3_i32_13 = arith.constant 3 : i32
    %c0_i32_14 = arith.constant 0 : i32
    %39 = vector.broadcast %c0_i32_14 : i32 to vector<2x128xi32>
    %40 = arith.cmpi sge, %38#1, %39 : vector<2x128xi32>
    %c0 = arith.constant 0 : index
    %c0_15 = arith.constant 0 : index
    %c0_16 = arith.constant 0 : index
    %41 = vector.load %arg3[%c0, %c0_15, %c0_16] : memref<1x2x128xi32, #tpu.memory_space<vmem>>, vector<1x2x128xi32>
    %42 = vector.shape_cast %41 : vector<1x2x128xi32> to vector<2x128xi32>
    %43 = vector.shape_cast %38#1 : vector<2x128xi32> to vector<1x2x128xi32>
    tpu.vector_store %arg3[%c0, %c0_15, %c0_16], %43 {strides = array<i32>} : memref<1x2x128xi32, #tpu.memory_space<vmem>>, vector<1x2x128xi32>,
    %c0_17 = arith.constant 0 : index
    %c0_18 = arith.constant 0 : index
    %c0_19 = arith.constant 0 : index
    %c0_20 = arith.constant 0 : index
    %44 = vector.load %arg4[%c0_17, %c0_18, %c0_19, %c0_20] : memref<1x3x2x128xf32, #tpu.memory_space<vmem>>, vector<1x1x2x128xf32>
    %45 = vector.shape_cast %44 : vector<1x1x2x128xf32> to vector<2x128xf32>
    %46 = vector.shape_cast %38#2 : vector<2x128xf32> to vector<1x1x2x128xf32>
    tpu.vector_store %arg4[%c0_17, %c0_18, %c0_19, %c0_20], %46 {strides = array<i32>} : memref<1x3x2x128xf32, #tpu.memory_space<vmem>>, vector<1x1x2x128xf32>,
    %c0_21 = arith.constant 0 : index
    %c1 = arith.constant 1 : index
    %c0_22 = arith.constant 0 : index
    %c0_23 = arith.constant 0 : index
    %47 = vector.load %arg4[%c0_21, %c1, %c0_22, %c0_23] : memref<1x3x2x128xf32, #tpu.memory_space<vmem>>, vector<1x1x2x128xf32>
    %48 = vector.shape_cast %47 : vector<1x1x2x128xf32> to vector<2x128xf32>
    %49 = vector.shape_cast %38#3 : vector<2x128xf32> to vector<1x1x2x128xf32>
    tpu.vector_store %arg4[%c0_21, %c1, %c0_22, %c0_23], %49 {strides = array<i32>} : memref<1x3x2x128xf32, #tpu.memory_space<vmem>>, vector<1x1x2x128xf32>,
    %cst_24 = arith.constant 1.000000e+00 : f32
    %50 = vector.broadcast %cst_24 : f32 to vector<2x128xf32>
    %51 = arith.subf %50, %38#2 : vector<2x128xf32>
    %52 = arith.subf %51, %38#3 : vector<2x128xf32>
    %cst_25 = arith.constant -1.000000e+00 : f32
    %53 = vector.broadcast %cst_25 : f32 to vector<2x128xf32>
    %54 = arith.select %40, %52, %53 : vector<2x128xi1>, vector<2x128xf32>
    %c0_26 = arith.constant 0 : index
    %c2 = arith.constant 2 : index
    %c0_27 = arith.constant 0 : index
    %c0_28 = arith.constant 0 : index
    %55 = vector.load %arg4[%c0_26, %c2, %c0_27, %c0_28] : memref<1x3x2x128xf32, #tpu.memory_space<vmem>>, vector<1x1x2x128xf32>
    %56 = vector.shape_cast %55 : vector<1x1x2x128xf32> to vector<2x128xf32>
    %57 = vector.shape_cast %54 : vector<2x128xf32> to vector<1x1x2x128xf32>
    tpu.vector_store %arg4[%c0_26, %c2, %c0_27, %c0_28], %57 {strides = array<i32>} : memref<1x3x2x128xf32, #tpu.memory_space<vmem>>, vector<1x1x2x128xf32>,
    return
  }
  func.func @transform_0(%arg0: i32, %arg1: i32) -> i32 {
    %c0_i32 = arith.constant 0 : i32
    %c0_i32_0 = arith.constant 0 : i32
    return %c0_i32 : i32
  }
  func.func @transform_1(%arg0: i32, %arg1: i32) -> (i32, i32, i32) {
    %c0_i32 = arith.constant 0 : i32
    %c0_i32_0 = arith.constant 0 : i32
    return %arg0, %arg1, %c0_i32 : i32, i32, i32
  }
  func.func @transform_2(%arg0: i32, %arg1: i32) -> (i32, i32, i32, i32) {
    %c0_i32 = arith.constant 0 : i32
    %c0_i32_0 = arith.constant 0 : i32
    %c0_i32_1 = arith.constant 0 : i32
    return %arg0, %c0_i32, %arg1, %c0_i32_0 : i32, i32, i32, i32
  }
}

</mosaic_0001>

<bundles_post_ra>
// kernel: tpu_custom_call.1
= control target key start
LH: loop header
LB: loop body
LE: loop exit
PB: predicated region body
PF: predicated region fallthrough
CT: control target
= control target key end

     0   :  { %s1372_s0 = inlined_call_operand.hbm [shape: f32[216], index: 0, kind: input, shape index: {}]   ;;  %s1373_s1 = inlined_call_operand.hbm [shape: s32[2,2,128], index: 1, kind: output, shape index: {0}]   ;;  %s1374_s2 = inlined_call_operand.hbm [shape: f32[2,3,2,128], index: 2, kind: output, shape index: {1}]  }
   0x1   :  { %1380 = sst [smem:[#allocation17_spill]] %s1372_s0 }
   0x2   :  { %8 = vsyncpa [#allocation4], 0 }
   0x3   :  { %9 = vsyncpa [#allocation3], 0 }
   0x4   :  { %11 = vsyncpa [#allocation3 + $0x1], 0 }
   0x5   :  { %12 = vsyncpa [#allocation7], 0 }
   0x6   :  { %14 = vsyncpa [#allocation7 + $0x1], 0  ;;  %s900_s9 = smov 0   ;;  %s902_s10 = smov 0  }
   0x7   :  { %s904_s11 = smov 0   ;;  %s906_s12 = smov 0  }
   0x8   :  { %s908_s13 = smov 0   ;;  %s910_s14 = smov 0  }
   0x9 LB: > { %1381 = sst [smem:[#allocation11_spill]] %s842_s10  ;;  %s581_s15 = sadd.s32 4294967295, %s858_s14   ;;  %s858_s14 = sphi %s910_s14, %s20_s14   ;;  %s854_s13 = sphi %s908_s13, %s1409_s13   ;;  %s850_s12 = sphi %s906_s12, %s1408_s12   ;;  %s846_s11 = sphi %s904_s11, %s1407_s11   ;;  %s842_s10 = sphi %s902_s10, %s1406_s10   ;;  %s838_s9 = sphi %s900_s9, %s1405_s9  }
   0xa   : > { %1382 = sst [smem:[#allocation12_spill]] %s846_s11  ;;  %s582_s16 = sadd.s32 4294967294, %s858_s14  }
   0xb   : > { %1383 = sst [smem:[#allocation13_spill]] %s854_s13  ;;  %s32_s17 = sadd.s32 1, %s854_s13 }
   0xc   : > { %s62_s18 = sadd.s32 1, %s846_s11  ;;  %p34_p0 = scmp.ge.s32.totalorder %s32_s17, 2 }
   0xd   : > { %p72_p1 = scmp.ne.s32.totalorder %s846_s11, %s842_s10  ;;  %p73_p2 = scmp.eq.s32.totalorder %s581_s15, 1 }
   0xe   : > { %p78_p3 = scmp.ne.s32.totalorder %s842_s10, %s838_s9  ;;  %s1411_s17 = smov (%p34_p0, %s32_s17), 0 }
   0xf   : > { %1384 = sst [smem:[#allocation14_spill]] %s1411_s17  ;;  %p940_p4 = por %p73_p2, %p72_p1 }
  0x10   : > { %p79_p5 = scmp.eq.s32.totalorder %s582_s16, 1  ;;  %s57_s20 = ssub.s32 %s854_s13, %s1411_s17 }
  0x11   : > { %p583_p6 = scmp.ge.s32.totalorder %s858_s14, 1  ;;  %p60_p7 = scmp.eq.s32.totalorder %s57_s20, 0 }
  0x12   : > { %p947_p8 = por %p79_p5, %p78_p3  ;;  %p114_p9 = scmp.lt.s32.totalorder %s858_s14, 3 }
  0x13   : > { %s953_s22 = scalar_select %p60_p7, %s846_s11, %s62_s18  }
  0x14   : > { %s1386_s21 = scalar_select %p947_p8, 1, 0 }
  0x15   : > { %1388 = sst [smem:[#allocation16_spill]] %s953_s22  ;;  %p955_p10 = pnand %p583_p6, %p114_p9 }
  0x16   : > { %1387 = sst [smem:[#allocation15_spill]] %s1386_s21  ;;  %p959_p11 = scmp.eq.s32.totalorder %s581_s15, 0 }
  0x17   : > { %p606_p12 = pneg %p955_p10  ;;  %s1391_s0 = sld [smem:[#allocation17_spill]] }
  0x19   : > { %p607_p13 = pnand %p959_p11, %p606_p12 }
  0x1b   : > { %p713_p1 = pneg %p607_p13 }
  0x1d   : > { %s711_s27 = scalar_lea.hbm %s1391_s0, 32 }
  0x1e   : > { %p712_p0 = scmp.ne.s32.totalorder %s1391_s0, %s711_s27  ;;  %p718_p5 = scmp.lt.u32.totalorder %s711_s27, %s1391_s0 }
  0x20   : > { %p714_p2 = pnand %p713_p1, %p712_p0 }
  0x22   : > { %p715_p3 = pneg %p714_p2 }
  0x24   : > { %p720_p6 = pnand %p718_p5, %p715_p3 }
  0x26   : > { %723 = shalt.err (!%p720_p6)
}
  0x27   : > { %s880_s4 = smov [#allocation2]   ;;  %138 = sbr.rel (%p955_p10) target bundleno = 178 (0xb2), region = 24 }
  0x28   : > { %609 = dma.hbm_to_smem (!%p607_p13), %s1391_s0, 32, %s880_s4, [#allocation4]  }
  0x2e   : > { %825 = dma.done.wait (%p959_p11), [#allocation4], 32  }
  0x2f   : > { %827 = vsyncadd (%p959_p11), [#allocation4], 4294967264 }
  0x30   : > { %144 = sfence }
  0x31   : > { %s986_s7 = sand.u32 1, %s842_s10   ;;  %v161_v0 = vlaneseq  ;;  %v998_v19 = vmov -1.0   ;;  %v1000_v20 = vmov -1.0   ;;  %v1002_v21 = vmov 4294967295   ;;  %s1006_s20 = smov 0  }
  0x32   : > { %s587_s8 = sshll.u32 %s986_s7, 1  ;;  %s596_s15 = smul.u32 6, %s986_s7  ;;  %v1004_v22 = vmov inf  }
  0x33   : > { %v162_v1 = vshrl.u32 %v161_v0, 7  ;;  %v164_v2 = vand.u32 127, %v161_v0  ;;  %s994_s16 = scalar_lea.vmem [#allocation5], %s587_s8 }
  0x34   : > { %s996_s18 = scalar_lea.vmem [#allocation6], %s596_s15 }
  0x35   : > { %v168_v3 = vmul.u32 128, %v162_v1 }
  0x37   : > { %v169_v4 = vadd.s32 %v168_v3, %v164_v2 }
  0x39   : > { %v170_v5 = vcvt.s32.f32 %v169_v4 }
  0x3b   : > { %v171_v6 = vadd.f32 0.5, %v170_v5 }
  0x3d   : > { %v172_v7 = vmul.f32 0.0625, %v171_v6 }
  0x3f   : > { %v173_v8 = vfloor.f32 %v172_v7 }
  0x41   : > { %v174_v9 = vmul.f32 16.0, %v173_v8  ;;  %v180_v10 = vmul.f32 2.0, %v173_v8 }
  0x43   : > { %v175_v11 = vsub.f32 %v170_v5, %v174_v9  ;;  %v181_v12 = vadd.f32 1.0, %v180_v10 }
  0x45   : > { %v176_v13 = vmul.f32 2.0, %v175_v11  ;;  %v182_v14 = vmul.f32 0.0625, %v181_v12 }
  0x47   : > { %v177_v15 = vadd.f32 1.0, %v176_v13  ;;  %v990_v16 = vsub.f32 1.0, %v182_v14 }
  0x49   : > { %v178_v17 = vmul.f32 0.0625, %v177_v15 }
  0x4b   : > { %v992_v18 = vsub.f32 1.0, %v178_v17 }
  0x4c LB: >> { %s1024_s23 = smul.u32 12, %s850_s12  ;;  %s1027_s24 = sshll.u32 %s878_s20, 2  ;;  %s878_s20 = sphi %s1006_s20, %s189_s20   ;;  %v874_v22 = vphi %v1004_v22, %v410_v22   ;;  %v870_v21 = vphi %v1002_v21, %v1403_v21   ;;  %v866_v20 = vphi %v1000_v20, %v1402_v20   ;;  %v862_v19 = vphi %v998_v19, %v1401_v19  }
  0x4d   : >> { %s250_s26 = sadd.s32 1, %s1027_s24  ;;  %s189_s20 = sadd.s32 1, %s878_s20  }
  0x4e   : >> { %s1031_s25 = sadd.s32 %s1027_s24, %s1024_s23  ;;  %s1036_s28 = sadd.s32 %s250_s26, %s1024_s23 }
  0x4f   : >> { %s197_s27 = smul.u32 9, %s1031_s25  ;;  %p186_p7 = scmp.ge.s32.totalorder %s189_s20, 3  }
  0x50   : >> { %s1039_s29 = smul.u32 9, %s1036_s28  ;;  %s445_s20 = sshll.u32 (%p186_p7), %s994_s16, 4  ;;  %s446_s20 = int_to_ptr.vmem [resolvable:$true] %s445_s20 }
  0x51   : >> { %s198_s3 = sld [smem:[#allocation2 + %s197_s27]]  ;;  %s199_s4 = sadd.s32 1, %s197_s27 }
  0x52   : >> { %s200_s5 = sld [smem:[#allocation2 + %s199_s4]]  ;;  %s201_s6 = sadd.s32 2, %s197_s27 }
  0x53   : >> { %s1042_s8 = sld [smem:[#allocation2 + %s201_s6]]  ;;  %s203_s15 = sadd.s32 3, %s197_s27 }
  0x54   : >> { %s204_s0 = sld [smem:[#allocation2 + %s203_s15]]  ;;  %s205_s17 = sadd.s32 4, %s197_s27 }
  0x55   : >> { %s206_s13 = sld [smem:[#allocation2 + %s205_s17]]  ;;  %s207_s22 = sadd.s32 5, %s197_s27 }
  0x56   : >> { %s1044_s26 = sld [smem:[#allocation2 + %s207_s22]]  ;;  %s209_s11 = sadd.s32 6, %s197_s27 }
  0x57   : >> { %s210_s10 = sld [smem:[#allocation2 + %s209_s11]]  ;;  %s211_s30 = sadd.s32 7, %s197_s27  ;;  %v215_v23 = vstv %s198_s3 }
  0x58   : >> { %s212_s21 = sld [smem:[#allocation2 + %s211_s30]]  ;;  %s213_s4 = sadd.s32 8, %s197_s27  ;;  %v216_v24 = vmul.f32 %v215_v23, %v992_v18  ;;  %v217_v25 = vstv %s200_s5 }
  0x59   : >> { %s1047_s6 = sld [smem:[#allocation2 + %s213_s4]]  ;;  %v218_v26 = vmul.f32 %v217_v25, %v990_v16  ;;  %v220_v27 = vstv %s1042_s8  ;;  %s254_s22 = sadd.s32 1, %s1039_s29 }
  0x5a   : >> { %s1051_s17 = sld [smem:[#allocation2 + %s1039_s29]]  ;;  %v222_v28 = vstv %s204_s0  ;;  %s256_s11 = sadd.s32 2, %s1039_s29 }
  0x5b   : >> { %v219_v29 = vadd.f32 %v218_v26, %v216_v24  ;;  %v223_v30 = vmul.f32 %v222_v28, %v992_v18  ;;  %v224_v31 = vstv %s206_s13  ;;  %s1057_s27 = sld [smem:[#allocation2 + %s254_s22]]  ;;  %s258_s3 = sadd.s32 3, %s1039_s29 }
  0x5c   : >> { %s1059_s30 = sld [smem:[#allocation2 + %s256_s11]]  ;;  %v225_v32 = vmul.f32 %v224_v31, %v990_v16  ;;  %s260_s5 = sadd.s32 4, %s1039_s29  ;;  %v227_v34 = vstv %s1044_s26 }
  0x5d   : >> { %v1064_v33 = vadd.f32 %v220_v27, %v219_v29  ;;  %v231_v35 = vstv %s210_s10  ;;  %s1067_s0 = sld [smem:[#allocation2 + %s258_s3]]  ;;  %s262_s13 = sadd.s32 5, %s1039_s29  ;;  %v246_v27 = vstv %s1031_s25 }
  0x5e   : >> { %s1069_s8 = sld [smem:[#allocation2 + %s260_s5]]  ;;  %v226_v36 = vadd.f32 %v225_v32, %v223_v30  ;;  %v232_v37 = vmul.f32 %v231_v35, %v992_v18  ;;  %v233_v38 = vstv %s212_s21  ;;  %s264_s15 = sadd.s32 6, %s1039_s29 }
  0x5f   : >> { %v229_v39 = vsub.f32 1.0, %v1064_v33  ;;  %v234_v40 = vmul.f32 %v233_v38, %v990_v16  ;;  %s1076_s26 = sld [smem:[#allocation2 + %s262_s13]]  ;;  %v236_v43 = vstv %s1047_s6  ;;  %s266_s21 = sadd.s32 7, %s1039_s29 }
  0x60   : >> { %s1078_s10 = sld [smem:[#allocation2 + %s264_s15]]  ;;  %v270_v41 = vstv %s1051_s17  ;;  %v1081_v42 = vadd.f32 %v227_v34, %v226_v36  ;;  %s268_s4 = sadd.s32 8, %s1039_s29 }
  0x61   : >> { %v271_v44 = vmul.f32 %v270_v41, %v992_v18  ;;  %v235_v45 = vadd.f32 %v234_v40, %v232_v37  ;;  %s1087_s22 = sld [smem:[#allocation2 + %s266_s21]]  ;;  %v272_v46 = vstv %s1057_s27  ;;  %s1392_s6 = sadd.s32 2, %s1027_s24 }
  0x62   : >> { %s1089_s11 = sld [smem:[#allocation2 + %s268_s4]]  ;;  %v230_v47 = vsub.f32 %v229_v39, %v1081_v42  ;;  %v238_v48 = vmin.f32 %v1064_v33, %v1081_v42  ;;  %v273_v49 = vmul.f32 %v272_v46, %v990_v16  ;;  %s1099_s29 = sadd.s32 %s1392_s6, %s1024_s23  ;;  %v275_v51 = vstv %s1059_s30 }
  0x63   : >> { %s360_s17 = sadd.s32 3, %s1027_s24  ;;  %v237_v50 = vadd.f32 %v236_v43, %v235_v45  ;;  %v277_v52 = vstv %s1067_s0  ;;  %s1106_s3 = smul.u32 9, %s1099_s29 }
  0x64   : >> { %v279_v53 = vstv %s1069_s8  ;;  %s1109_s27 = sadd.s32 %s360_s17, %s1024_s23  ;;  %v239_v54 = vmin.f32 %v238_v48, %v230_v47  ;;  %v274_v55 = vadd.f32 %v273_v49, %v271_v44  ;;  %v278_v56 = vmul.f32 %v277_v52, %v992_v18 }
  0x65   : >> { %v280_v57 = vmul.f32 %v279_v53, %v990_v16  ;;  %s1114_s24 = smul.u32 9, %s1109_s27  ;;  %vm241_vm0 = vcmp.ge.f32.partialorder %v237_v50, 0.0  ;;  %v282_v58 = vstv %s1076_s26  ;;  %s1119_s30 = sld [smem:[#allocation2 + %s1106_s3]]  ;;  %vm243_vm3 = vcmp.lt.f32.partialorder %v237_v50, %v874_v22 }
  0x66   : >> { %v286_v59 = vstv %s1078_s10  ;;  %s309_s5 = sadd.s32 1, %s1106_s3  ;;  %vm240_vm1 = vcmp.gt.f32.partialorder %v239_v54, 0.0  ;;  %v1122_v60 = vadd.f32 %v275_v51, %v274_v55  ;;  %s311_s0 = sadd.s32 2, %s1106_s3  ;;  %v301_v44 = vstv %s1036_s28 }
  0x67   : >> { %v281_v61 = vadd.f32 %v280_v57, %v278_v56  ;;  %v287_v62 = vmul.f32 %v286_v59, %v992_v18  ;;  %s1125_s23 = sld [smem:[#allocation2 + %s309_s5]]  ;;  %vm242_vm2 = vmand %vm240_vm1, %vm241_vm0  ;;  %v288_v63 = vstv %s1087_s22  ;;  %s313_s13 = sadd.s32 3, %s1106_s3 }
  0x68   : >> { %s1130_s8 = sld [smem:[#allocation2 + %s311_s0]]  ;;  %v284_v1 = vsub.f32 1.0, %v1122_v60  ;;  %v289_v2 = vmul.f32 %v288_v63, %v990_v16  ;;  %s315_s26 = sadd.s32 4, %s1106_s3  ;;  %v291_v3 = vstv %s1089_s11  ;;  %vm1144_vm4 = vmand %vm242_vm2, %vm243_vm3 }
  0x69   : >> { %v1133_v0 = vadd.f32 %v282_v58, %v281_v61  ;;  %s1137_s15 = sld [smem:[#allocation2 + %s313_s13]]  ;;  %s317_s21 = sadd.s32 5, %s1106_s3  ;;  %v245_v13 = vsel %vm1144_vm4, %v237_v50, %v874_v22  ;;  %v247_v43 = vsel %vm1144_vm4, %v246_v27, %v870_v21 }
  0x6a   : >> { %s1141_s10 = sld [smem:[#allocation2 + %s315_s26]]  ;;  %v290_v6 = vadd.f32 %v289_v2, %v287_v62  ;;  %s319_s22 = sadd.s32 6, %s1106_s3 }
  0x6b   : >> { %v285_v5 = vsub.f32 %v284_v1, %v1133_v0  ;;  %v293_v7 = vmin.f32 %v1122_v60, %v1133_v0  ;;  %s1151_s4 = sld [smem:[#allocation2 + %s317_s21]]  ;;  %s321_s6 = sadd.s32 7, %s1106_s3  ;;  %v325_v8 = vstv %s1119_s30  ;;  %v248_v1 = vsel %vm1144_vm4, %v1064_v33, %v866_v20 }
  0x6c   : >> { %s1154_s11 = sld [smem:[#allocation2 + %s319_s22]]  ;;  %v292_v9 = vadd.f32 %v291_v3, %v290_v6  ;;  %s323_s5 = sadd.s32 8, %s1106_s3  ;;  %v326_v11 = vmul.f32 %v325_v8, %v992_v18  ;;  %v249_v3 = vsel %vm1144_vm4, %v1081_v42, %v862_v19  ;;  %v356_v20 = vstv %s1099_s29 }
  0x6d   : >> { %v294_v10 = vmin.f32 %v293_v7, %v285_v5  ;;  %s1158_s17 = sld [smem:[#allocation2 + %s321_s6]]  ;;  %v327_v12 = vstv %s1125_s23  ;;  %s364_s3 = sadd.s32 1, %s1114_s24 }
  0x6e   : >> { %s1166_s0 = sld [smem:[#allocation2 + %s323_s5]]  ;;  %v328_v14 = vmul.f32 %v327_v12, %v990_v16  ;;  %vm296_vm6 = vcmp.ge.f32.partialorder %v292_v9, 0.0  ;;  %s366_s13 = sadd.s32 2, %s1114_s24  ;;  %v330_v23 = vstv %s1130_s8  ;;  %vm298_vm8 = vcmp.lt.f32.partialorder %v292_v9, %v245_v13 }
  0x6f   : >> { %s1170_s30 = sld [smem:[#allocation2 + %s1114_s24]]  ;;  %vm295_vm5 = vcmp.gt.f32.partialorder %v294_v10, 0.0  ;;  %v332_v15 = vstv %s1137_s15  ;;  %s368_s15 = sadd.s32 3, %s1114_s24 }
  0x70   : >> { %v329_v17 = vadd.f32 %v328_v14, %v326_v11  ;;  %v333_v22 = vmul.f32 %v332_v15, %v992_v18  ;;  %v334_v24 = vstv %s1141_s10  ;;  %s1178_s23 = sld [smem:[#allocation2 + %s364_s3]]  ;;  %vm1182_vm7 = vmand %vm295_vm5, %vm296_vm6  ;;  %s370_s8 = sadd.s32 4, %s1114_s24 }
  0x71   : >> { %s1180_s26 = sld [smem:[#allocation2 + %s366_s13]]  ;;  %v335_v26 = vmul.f32 %v334_v24, %v990_v16  ;;  %v337_v28 = vstv %s1151_s4  ;;  %s372_s22 = sadd.s32 5, %s1114_s24  ;;  %vm1203_vm9 = vmand %vm1182_vm7, %vm298_vm8 }
  0x72   : >> { %s1191_s21 = sld [smem:[#allocation2 + %s368_s15]]  ;;  %v1195_v29 = vadd.f32 %v330_v23, %v329_v17  ;;  %v341_v31 = vstv %s1154_s11  ;;  %s374_s6 = sadd.s32 6, %s1114_s24  ;;  %v300_v47 = vsel %vm1203_vm9, %v292_v9, %v245_v13  ;;  %v302_v9 = vsel %vm1203_vm9, %v301_v44, %v247_v43 }
  0x73   : >> { %s1193_s10 = sld [smem:[#allocation2 + %s370_s8]]  ;;  %v336_v30 = vadd.f32 %v335_v26, %v333_v22  ;;  %v343_v32 = vstv %s1158_s17  ;;  %v342_v35 = vmul.f32 %v341_v31, %v992_v18  ;;  %s376_s11 = sadd.s32 7, %s1114_s24  ;;  %v303_v10 = vsel %vm1203_vm9, %v1122_v60, %v248_v1 }
  0x74   : >> { %v344_v36 = vmul.f32 %v343_v32, %v990_v16  ;;  %s1209_s25 = sld [smem:[#allocation2 + %s372_s22]]  ;;  %v339_v39 = vsub.f32 1.0, %v1195_v29  ;;  %v346_v40 = vstv %s1166_s0  ;;  %s378_s17 = sadd.s32 8, %s1114_s24  ;;  %v304_v11 = vsel %vm1203_vm9, %v1133_v0, %v249_v3 }
  0x75   : >> { %s1211_s4 = sld [smem:[#allocation2 + %s374_s6]]  ;;  %v380_v37 = vstv %s1170_s30  ;;  %v1214_v38 = vadd.f32 %v337_v28, %v336_v30  ;;  %v411_v60 = vstv %s1109_s27  ;;  %s592_s28 = sshll.u32 (%p186_p7), %s850_s12, 5 }
  0x76   : >> { %v381_v41 = vmul.f32 %v380_v37, %v992_v18  ;;  %v345_v45 = vadd.f32 %v344_v36, %v342_v35  ;;  %s377_s5 = sld [smem:[#allocation2 + %s376_s11]]  ;;  %v382_v46 = vstv %s1178_s23  ;;  %s1294_s24 = scalar_lea.hbm (%p186_p7), %s1373_s1, %s592_s28 }
  0x77   : >> { %s1225_s30 = sld [smem:[#allocation2 + %s378_s17]]  ;;  %v340_v48 = vsub.f32 %v339_v39, %v1214_v38  ;;  %v348_v49 = vmin.f32 %v1195_v29, %v1214_v38  ;;  %v383_v50 = vmul.f32 %v382_v46, %v990_v16  ;;  %v385_v21 = vstv %s1180_s26  ;;  %s426_s0 = scalar_lea.sflag (%p186_p7), [#allocation3], %s986_s7 }
  0x78   : >> { %v347_v51 = vadd.f32 %v346_v40, %v345_v45  ;;  %v387_v52 = vstv %s1191_s21  ;;  %s724_s3 = scalar_lea.vmem (%p186_p7), %s446_s20, 32  ;;  %s881_s13 = smov (%p186_p7), [#allocation5]  }
  0x79   : >> { %v389_v53 = vstv %s1193_s10  ;;  %v349_v54 = vmin.f32 %v348_v49, %v340_v48  ;;  %v384_v55 = vadd.f32 %v383_v50, %v381_v41  ;;  %v388_v56 = vmul.f32 %v387_v52, %v992_v18  ;;  %p725_p9 = scmp.ne.s32.totalorder (%p186_p7), %s446_s20, %s724_s3  ;;  %s728_s23 = sshll.u32 (%p186_p7), %s881_s13, 4  ;;  %s729_s23 = int_to_ptr.vmem [resolvable:$false] %s728_s23 }
  0x7a   : >> { %v390_v57 = vmul.f32 %v389_v53, %v990_v16  ;;  %vm351_vm10 = vcmp.ge.f32.partialorder %v347_v51, 0.0  ;;  %vm353_vm11 = vcmp.lt.f32.partialorder %v347_v51, %v300_v47  ;;  %v392_v58 = vstv %s1209_s25  ;;  %s730_s26 = scalar_lea.vmem (%p186_p7), %s729_s23, 64  ;;  %p731_p12 = scmp.lt.s32.totalorder (%p186_p7), %s446_s20, %s729_s23 }
  0x7b   : >> { %v396_v59 = vstv %s1211_s4  ;;  %vm350_vm12 = vcmp.gt.f32.partialorder %v349_v54, 0.0  ;;  %v386_v61 = vadd.f32 %v385_v21, %v384_v55  ;;  %p726_p10 = pnand (%p186_p7), %p725_p9, %p940_p4  ;;  %p732_p13 = scmp.lt.s32.totalorder (%p186_p7), %s730_s26, %s724_s3 }
  0x7c   : >> { %v391_v62 = vadd.f32 %v390_v57, %v388_v56  ;;  %v397_v63 = vmul.f32 %v396_v59, %v992_v18  ;;  %vm352_vm13 = vmand %vm350_vm12, %vm351_vm10  ;;  %v398_v2 = vstv %s377_s5 }
  0x7d   : >> { %vm1250_vm14 = vmand %vm352_vm13, %vm353_vm11  ;;  %v394_v7 = vsub.f32 1.0, %v386_v61  ;;  %v399_v8 = vmul.f32 %v398_v2, %v990_v16  ;;  %v401_v33 = vstv %s1225_s30  ;;  %p727_p11 = pneg (%p186_p7), %p726_p10  ;;  %p733_p0 = por (%p186_p7), %p732_p13, %p731_p12 }
  0x7e   : >> { %v393_v6 = vadd.f32 %v392_v58, %v391_v62  ;;  %v355_v12 = vsel %vm1250_vm14, %v347_v51, %v300_v47  ;;  %v357_v15 = vsel %vm1250_vm14, %v356_v20, %v302_v9  ;;  %v358_v17 = vsel %vm1250_vm14, %v1195_v29, %v303_v10 }
  0x7f   : >> { %v400_v19 = vadd.f32 %v399_v8, %v397_v63  ;;  %v359_v23 = vsel %vm1250_vm14, %v1214_v38, %v304_v11  ;;  %p734_p1 = pnand (%p186_p7), %p733_p0, %p727_p11 }
  0x80   : >> { %v395_v4 = vsub.f32 %v394_v7, %v393_v6  ;;  %v403_v42 = vmin.f32 %v386_v61, %v393_v6 }
  0x81   : >> { %v402_v13 = vadd.f32 %v401_v33, %v400_v19 }
  0x82   : >> { %v404_v14 = vmin.f32 %v403_v42, %v395_v4  ;;  %188 = sbr.rel (!%p186_p7) target bundleno = 76 (0x4c), region = 87 }
  0x83   : >> { %vm406_vm0 = vcmp.ge.f32.partialorder %v402_v13, 0.0  ;;  %vm408_vm1 = vcmp.lt.f32.partialorder %v402_v13, %v355_v12 }
  0x84   : >> { %vm405_vm15 = vcmp.gt.f32.partialorder %v404_v14, 0.0 }
  0x85   : >> { %vm407_vm2 = vmand %vm405_vm15, %vm406_vm0 }
  0x86   : >> { %vm409_vm3 = vmand %vm407_vm2, %vm408_vm1 }
  0x87   : >> { %v410_v22 = vsel %vm409_vm3, %v402_v13, %v355_v12   ;;  %v412_v0 = vsel %vm409_vm3, %v411_v60, %v357_v15   ;;  %v413_v24 = vsel %vm409_vm3, %v386_v61, %v358_v17   ;;  %v414_v25 = vsel %vm409_vm3, %v393_v6, %v359_v23  }
  0x88   : >> { %v1401_v19 = vmov %v414_v25  ;;  %v1402_v20 = vmov %v413_v24  ;;  %v1403_v21 = vmov %v412_v0  ;;  %416 = vst [vmem:[%s994_s16] sm:$0x3] (%p186_p7), %v412_v0  ;;  %417 = vst [vmem:[%s996_s18] sm:$0x3] (%p186_p7), %v413_v24  ;;  %v420_v26 = vsub.f32 (%p186_p7), 1.0, %v413_v24 }
  0x89   : > { %589 = vst [vmem:[%s996_s18 + $0x2] sm:$0x3] %v414_v25  ;;  %vm415_vm4 = vcmp.ge.s32.totalorder %v412_v0, 0 }
  0x8a   : > { %v421_v22 = vsub.f32 %v420_v26, %v414_v25 }
  0x8b   : > { %737 = shalt.err (!%p734_p1)
}
  0x8c   : > { %s738_s16 = scalar_lea.hbm %s1294_s24, 32  ;;  %s742_s21 = scalar_lea.hbm %s1373_s1, 64 }
  0x8d   : > { %p739_p2 = scmp.ne.s32.totalorder %s1294_s24, %s738_s16  ;;  %p743_p6 = scmp.lt.u32.totalorder %s1294_s24, %s1373_s1 }
  0x8e   : > { %p744_p7 = scmp.lt.u32.totalorder %s742_s21, %s738_s16  ;;  %p746_p10 = scmp.lt.u32.totalorder %s738_s16, %s1294_s24 }
  0x8f   : > { %p740_p3 = pnand %p739_p2, %p940_p4 }
  0x90   : > { %p745_p9 = por %p744_p7, %p743_p6 }
  0x91   : > { %p741_p5 = pneg %p740_p3 }
  0x92   : > { %p747_p11 = por %p746_p10, %p745_p9 }
  0x94   : > { %p748_p12 = pnand %p747_p11, %p741_p5 }
  0x96   : > { %751 = shalt.err (!%p748_p12)
}
  0x97   : > { %602 = dma.vmem_to_hbm [thread:$0]  (%p940_p4), %s446_s20, 32, %s1294_s24, %s426_s0   ;;  %v422_v16 = vsel %vm415_vm4, %v421_v22, -1.0 }
  0x98   : > { %s597_s6 = smul.u32 96, %s850_s12  ;;  %s459_s25 = sshll.u32 %s996_s18, 4  ;;  %590 = vst [vmem:[%s996_s18 + $0x4] sm:$0x3] %v422_v16  ;;  %s1319_s25 = int_to_ptr.vmem [resolvable:$true] %s459_s25 }
  0x99   : > { %s431_s5 = scalar_lea.sflag [#allocation7], %s986_s7  ;;  %s752_s30 = scalar_lea.vmem %s1319_s25, 96 }
  0x9a   : > { %s1324_s17 = scalar_lea.hbm %s1374_s2, %s597_s6  ;;  %p753_p13 = scmp.ne.s32.totalorder %s1319_s25, %s752_s30 }
  0x9b   : > { %s882_s28 = smov [#allocation6]  }
  0x9c   : > { %p754_p0 = pnand %p753_p13, %p940_p4  ;;  %s756_s12 = sshll.u32 %s882_s28, 4  ;;  %s757_s12 = int_to_ptr.vmem [resolvable:$false] %s756_s12 }
  0x9d   : > { %s758_s18 = scalar_lea.vmem %s757_s12, 192  ;;  %p759_p2 = scmp.lt.s32.totalorder %s1319_s25, %s757_s12 }
  0x9e   : > { %p755_p1 = pneg %p754_p0  ;;  %p760_p3 = scmp.lt.s32.totalorder %s758_s18, %s752_s30 }
  0xa0   : > { %p761_p5 = por %p760_p3, %p759_p2 }
  0xa2   : > { %p762_p6 = pnand %p761_p5, %p755_p1 }
  0xa4   : > { %765 = shalt.err (!%p762_p6)
}
  0xa5   : > { %s766_s29 = scalar_lea.hbm %s1324_s17, 96  ;;  %s770_s20 = scalar_lea.hbm %s1374_s2, 192 }
  0xa6   : > { %p767_p7 = scmp.ne.s32.totalorder %s1324_s17, %s766_s29  ;;  %p771_p11 = scmp.lt.u32.totalorder %s1324_s17, %s1374_s2 }
  0xa7   : > { %p772_p12 = scmp.lt.u32.totalorder %s770_s20, %s766_s29  ;;  %p774_p0 = scmp.lt.u32.totalorder %s766_s29, %s1324_s17 }
  0xa8   : > { %p768_p9 = pnand %p767_p7, %p940_p4 }
  0xa9   : > { %p773_p13 = por %p772_p12, %p771_p11 }
  0xaa   : > { %p769_p10 = pneg %p768_p9 }
  0xab   : > { %p775_p1 = por %p774_p0, %p773_p13 }
  0xad   : > { %p776_p2 = pnand %p775_p1, %p769_p10 }
  0xaf   : > { %779 = shalt.err (!%p776_p2)
}
  0xb0   : > { %s883_s13 = smov 32   ;;  %s884_s23 = smov 2  }
  0xb1   : > { %603 = dma.vmem_to_hbm [thread:$0]  (%p940_p4), %s1319_s25, 96, %s1324_s17, %s431_s5, %s883_s13, %s883_s13, %s884_s23  }
  0xb2 PF: > { %p619_p3 = scmp.ge.s32.totalorder %s858_s14, 2  ;;  %s474_s16 = sand.u32 1, %s838_s9  }
  0xb3   : > { %s475_s15 = scalar_lea.sflag [#allocation3], %s474_s16 }
  0xb4   : > { %p611_p5 = pnand %p619_p3, %p947_p8 }
  0xb6   : > { %829 = dma.done.wait (!%p611_p5), %s475_s15, 32  }
  0xb7   : > { %831 = vsyncadd (!%p611_p5), %s475_s15, 4294967264  ;;  %s484_s8 = scalar_lea.sflag [#allocation7], %s474_s16 }
  0xb8   : > { %833 = dma.done.wait (!%p611_p5), %s484_s8, 96  }
  0xb9   : > { %835 = vsyncadd (!%p611_p5), %s484_s8, 4294967200  ;;  %s20_s14 = sadd.s32 1, %s858_s14   ;;  %s1405_s9 = sld [smem:[#allocation11_spill]] }
  0xba   : > { %p17_p6 = scmp.ge.s32.totalorder %s20_s14, 4   ;;  %s1406_s10 = sld [smem:[#allocation12_spill]] }
  0xbb   : > { %s1407_s11 = sld [smem:[#allocation16_spill]]  ;;  %s1408_s12 = sld [smem:[#allocation13_spill]] }
  0xbc   : > { %s1409_s13 = sld [smem:[#allocation14_spill]]  ;;  %19 = sbr.rel (!%p17_p6) target bundleno = 9 (0x9), region = 98 }
  0xc3   :  { %489 = vsyncpa [#allocation3], 1 }
  0xc4   :  { %491 = vsyncpa [#allocation3 + $0x1], 1 }
  0xc5   :  { %492 = vsyncpa [#allocation7], 1 }
  0xc6   :  { %494 = vsyncpa [#allocation7 + $0x1], 1 }
  0xc7   :  { %495 = vsyncpa [#allocation4], 1 }
  0xc8   :  { %497 = vsyncpa [#allocation4 + $0x1], 1 }

</bundles_post_ra>
